<compile_context>
chip_gen: v6e
topology: v6e:2x2x1
jax: 0.10.0
libtpu: 0.0.40
codegen_flags: <defaults>
</compile_context>

<pallas_src>
import functools

import jax
import jax.numpy as jnp
from jax.experimental import pallas as pl
from jax.experimental.pallas import tpu as pltpu


def _round_up(n, m):
    return ((n + m - 1) // m) * m


@functools.lru_cache(maxsize=None)
def _vmem_limit_bytes():
    """Generation-specific scoped-VMEM limit: 3/4 of physical capacity."""
    cap = 64 << 20  # conservative fallback (v7x has the smallest VMEM per TC)
    try:
        cap = int(pltpu.get_tpu_info().vmem_capacity_bytes)
    except Exception:
        pass
    return (cap * 3) // 4  # 48 MiB on v7x (64 MiB), 96 MiB on v5e/v6e (128 MiB)


def _vae_kernel(x_ref, w1_ref, b1_ref, we2_ref, be2_ref, wd1_ref, bd1_ref,
                wd2_ref, bd2_ref, eps_ref,
                recon_ref, mulv_ref, *, bnd):
    f32 = jnp.float32
    bf16 = jnp.bfloat16

    # ---- encoder fc1: [TB, D] @ [D, HID] (bf16 in, f32 acc) ----
    h = jnp.dot(x_ref[...], w1_ref[...], preferred_element_type=f32) + b1_ref[...]
    h = jnp.maximum(h, 0.0)                                   # ReLU in f32

    # ---- fused mu||logvar projection: one lane-dense N = 2*BND matmul ----
    ml = jnp.dot(h.astype(bf16), we2_ref[...],
                 preferred_element_type=f32) + be2_ref[...]   # [TB, 2*BND] f32
    mulv_ref[...] = ml                                        # unmasked 128-lane store

    # ---- reparameterize at full 128-lane width ----
    # roll swaps the halves so logvar sits under the mu lanes.  eps_ref is
    # zero-padded in lanes >= bnd, so the std*eps product vanishes there; the
    # jnp.minimum clamp is an inf-guard: exp(0.5*mu) in the padded lanes could
    # overflow to +inf and inf * 0 = NaN would poison the zero-row decoder
    # matmul.  Do NOT remove the clamp.
    rolled = pltpu.roll(ml, shift=bnd, axis=1)                # [TB, 2*BND]
    std = jnp.exp(0.5 * jnp.minimum(rolled, 170.0))           # EUP, finite in f32
    z_ext = ml + std * eps_ref[...]                           # lanes >= bnd: +0

    # ---- decoder: K = 2*BND (=128) contraction, then fc2 + sigmoid ----
    hd = jnp.dot(z_ext.astype(bf16), wd1_ref[...],
                 preferred_element_type=f32) + bd1_ref[...]
    hd = jnp.maximum(hd, 0.0)
    out = jnp.dot(hd.astype(bf16), wd2_ref[...],
                  preferred_element_type=f32) + bd2_ref[...]
    # sigmoid in f32 (safe on v5e: no bf16 VPU/EUP), cast only at the store so
    # the recon HBM writeback is bf16 (half the previous traffic).
    recon_ref[...] = jax.nn.sigmoid(out).astype(recon_ref.dtype)


def pack_params(params):
    """One-time weight packing.  Done OUTSIDE the per-call forward so repeated
    calls do not re-read the f32 weights and re-write bf16 slabs in HBM."""
    (w1, b1, wmu, bmu, wlv, blv, wd1, bd1, wd2, bd2) = params
    hid = w1.shape[1]
    bnd = wmu.shape[1]
    packed = {
        "w1": w1.astype(jnp.bfloat16),                                        # [D, HID]
        "b1": b1.astype(jnp.float32).reshape(1, hid),                         # [1, HID]
        "we2": jnp.concatenate([wmu, wlv], axis=1).astype(jnp.bfloat16),      # [HID, 2*BND]
        "be2": jnp.concatenate([bmu, blv], axis=1)
                  .astype(jnp.float32).reshape(1, 2 * bnd),                   # [1, 2*BND]
        # zero rows appended so the decoder contraction is K = 2*BND (lane-dense)
        "wd1": jnp.concatenate([wd1, jnp.zeros((bnd, hid), wd1.dtype)],
                               axis=0).astype(jnp.bfloat16),                  # [2*BND, HID]
        "bd1": bd1.astype(jnp.float32).reshape(1, hid),                       # [1, HID]
        "wd2": wd2.astype(jnp.bfloat16),                                      # [HID, D]
        "bd2": bd2.astype(jnp.float32).reshape(1, -1),                        # [1, D]
    }
    return packed


@jax.jit
def image_vae_forward(x_nchw, packed, eps):
    """Runs the fused VAE forward. Returns (recon_nchw [bf16], mu, logvar)."""
    B, C, H, W = x_nchw.shape
    D = C * H * W

    hid = packed["w1"].shape[1]
    bnd2 = packed["we2"].shape[1]   # lane-dense fused mu||logvar width (128 when bnd == 64)
    bnd = bnd2 // 2

    vmem_limit = _vmem_limit_bytes()
    # Bigger tiles amortize per-grid-step overhead; allow 512 rows where the
    # bigger v5e/v6e VMEM permits, cap at 256 on v7x.
    tb_cap = 512 if vmem_limit >= (80 << 20) else 256

    # Batch tiling: bf16-friendly (multiple of 16) tiles, and ALWAYS an even
    # number of tiles (>= 2) so the "parallel" batch axis shards across v7x's
    # two TensorCores (a size-1 grid would leave one TC idle).  At tiny batch
    # sizes this pads extra rows (wasted compute) — accepted tradeoff.
    B16 = _round_up(B, 16)
    TB = min(tb_cap, max(16, _round_up(pl.cdiv(B16, 2), 16)))
    n_tiles = pl.cdiv(B16, TB)
    n_tiles = n_tiles + (n_tiles % 2)          # force even tile count
    B_pad = n_tiles * TB

    x_flat = x_nchw.reshape(B, D).astype(jnp.bfloat16)
    if B_pad != B:
        x_flat = jnp.pad(x_flat, ((0, B_pad - B), (0, 0)))
    eps_ext = jnp.pad(eps.astype(jnp.float32),
                      ((0, B_pad - B), (0, bnd2 - bnd)))      # [B_pad, 2*BND], zero-padded

    kernel = functools.partial(_vae_kernel, bnd=bnd)
    const = lambda i: (0, 0)   # weights: same block every grid step -> VMEM-resident
    # Resident (constant-index) blocks only need one buffer.
    resident = pl.Buffered(1)

    def wspec(shape):
        return pl.BlockSpec(shape, const, pipeline_mode=resident)

    grid_spec = pltpu.PrefetchScalarGridSpec(
        num_scalar_prefetch=0,
        grid=(n_tiles,),
        in_specs=[
            pl.BlockSpec((TB, D), lambda i: (i, 0)),      # x (streamed, double-buffered)
            wspec((D, hid)),                              # w1
            wspec((1, hid)),                              # b1
            wspec((hid, bnd2)),                           # wmu||wlv
            wspec((1, bnd2)),                             # bmu||blv
            wspec((bnd2, hid)),                           # wd1 (zero-padded K)
            wspec((1, hid)),                              # bd1
            wspec((hid, D)),                              # wd2
            wspec((1, D)),                                # bd2
            pl.BlockSpec((TB, bnd2), lambda i: (i, 0)),   # eps (lane-padded, streamed)
        ],
        out_specs=(
            pl.BlockSpec((TB, D), lambda i: (i, 0)),      # recon (flat, bf16)
            pl.BlockSpec((TB, bnd2), lambda i: (i, 0)),   # mu || logvar (f32)
        ),
    )

    weight_bytes = sum(int(packed[k].size) * packed[k].dtype.itemsize for k in packed)
    cost = pl.CostEstimate(
        flops=2 * B_pad * (D * hid + hid * bnd2 + bnd2 * hid + hid * D),
        transcendentals=B_pad * (D + bnd2),               # sigmoid + exp
        bytes_accessed=(B_pad * D * 2                     # x (bf16)
                        + B_pad * bnd2 * 4                # eps (f32)
                        + B_pad * D * 2                   # recon (bf16)
                        + B_pad * bnd2 * 4                # mu||logvar (f32)
                        + weight_bytes),
    )

    recon_flat, mulv = pl.pallas_call(
        kernel,
        out_shape=(
            jax.ShapeDtypeStruct((B_pad, D), jnp.bfloat16),   # bf16 recon writeback
            jax.ShapeDtypeStruct((B_pad, bnd2), jnp.float32),
        ),
        grid_spec=grid_spec,
        compiler_params=pltpu.CompilerParams(
            dimension_semantics=("parallel",),   # shard batch tiles across TCs (v7x)
            vmem_limit_bytes=vmem_limit,         # 48 MiB on v7x, ~96 MiB on v5e/v6e
        ),
        cost_estimate=cost,
    )(x_flat, packed["w1"], packed["b1"], packed["we2"], packed["be2"],
      packed["wd1"], packed["bd1"], packed["wd2"], packed["bd2"], eps_ext)

    recon = recon_flat[:B].reshape(B, C, H, W)
    mu = mulv[:B, :bnd]
    logvar = mulv[:B, bnd:]
    return recon, mu, logvar


def init_params(key, d, hid, bnd):
    """Deterministic parameter init (PyTorch-Linear-style uniform +-1/sqrt(fan_in))."""
    def lin(k, fan_in, fan_out):
        kw, kb = jax.random.split(k)
        lim = 1.0 / jnp.sqrt(fan_in)
        w = jax.random.uniform(kw, (fan_in, fan_out), jnp.float32, -lim, lim)
        b = jax.random.uniform(kb, (1, fan_out), jnp.float32, -lim, lim)
        return w, b

    ks = jax.random.split(key, 5)
    w1, b1 = lin(ks[0], d, hid)        # encoder fc1
    wmu, bmu = lin(ks[1], hid, bnd)    # encoder -> mu
    wlv, blv = lin(ks[2], hid, bnd)    # encoder -> logvar
    wd1, bd1 = lin(ks[3], bnd, hid)    # decoder fc1
    wd2, bd2 = lin(ks[4], hid, d)      # decoder fc2
    return (w1, b1, wmu, bmu, wlv, blv, wd1, bd1, wd2, bd2)


if __name__ == "__main__":
    B, C, H, W = 2, 4, 16, 16
    BND = 64          # bottleneck dim (bnd)
    HID = 128         # hidden width
    D = C * H * W     # 1024

    root = jax.random.PRNGKey(0)
    k_x, k_p, k_eps = jax.random.split(root, 3)

    x = jax.random.uniform(k_x, (B, C, H, W), jnp.float32)        # "image" input
    params = init_params(k_p, D, HID, BND)
    eps = jax.random.normal(k_eps, (B, BND), jnp.float32)         # reparam noise

    packed = jax.block_until_ready(pack_params(params))           # one-time packing
    recon, mu, logvar = image_vae_forward(x, packed, eps)
    jax.block_until_ready((recon, mu, logvar))

    # pure-JAX reference of the same math (bf16 MXU inputs, f32 accumulation)
    (w1, b1, wmu, bmu, wlv, blv, wd1, bd1, wd2, bd2) = params
    bf = lambda a: a.astype(jnp.bfloat16)
    dot = lambda a, b: jnp.dot(bf(a), bf(b), preferred_element_type=jnp.float32)
    xf = x.reshape(B, D)
    h = jnp.maximum(dot(xf, w1) + b1, 0.0)
    mu_r = dot(h, wmu) + bmu
    lv_r = dot(h, wlv) + blv
    z = mu_r + jnp.exp(0.5 * lv_r) * eps
    hd = jnp.maximum(dot(z, wd1) + bd1, 0.0)
    recon_r = jax.nn.sigmoid(dot(hd, wd2) + bd2).reshape(B, C, H, W)

    assert recon.shape == (B, C, H, W)
    assert mu.shape == (B, BND) and logvar.shape == (B, BND)
    assert jnp.allclose(mu, mu_r, atol=2e-2, rtol=2e-2)
    assert jnp.allclose(logvar, lv_r, atol=2e-2, rtol=2e-2)
    assert jnp.allclose(recon.astype(jnp.float32), recon_r, atol=2e-2, rtol=2e-2)

    print("KERNEL_OK")
</pallas_src>

<mosaic_0001>
module attributes {stable_mosaic.version = 11 : i64} {
  func.func @_vae_kernel(%arg0: i32, %arg1: memref<16x1024xbf16, #tpu.memory_space<vmem>>, %arg2: memref<1024x128xbf16, #tpu.memory_space<vmem>>, %arg3: memref<1x128xf32, #tpu.memory_space<vmem>>, %arg4: memref<128x128xbf16, #tpu.memory_space<vmem>>, %arg5: memref<1x128xf32, #tpu.memory_space<vmem>>, %arg6: memref<128x128xbf16, #tpu.memory_space<vmem>>, %arg7: memref<1x128xf32, #tpu.memory_space<vmem>>, %arg8: memref<128x1024xbf16, #tpu.memory_space<vmem>>, %arg9: memref<1x1024xf32, #tpu.memory_space<vmem>>, %arg10: memref<16x128xf32, #tpu.memory_space<vmem>>, %arg11: memref<16x1024xbf16, #tpu.memory_space<vmem>>, %arg12: memref<16x128xf32, #tpu.memory_space<vmem>>) attributes {dimension_semantics = [#tpu.dimension_semantics<parallel>], iteration_bounds = array<i64: 2>, scalar_prefetch = 0 : i64, scratch_operands = 0 : i64, tpu.core_type = #tpu.core_type<tc>, window_params = [{transform_indices = @transform_0, window_bounds = array<i64: 16, 1024>}, {pipeline_mode = #tpu.pipeline_mode<synchronous>, transform_indices = @transform_1, window_bounds = array<i64: 1024, 128>}, {pipeline_mode = #tpu.pipeline_mode<synchronous>, transform_indices = @transform_2, window_bounds = array<i64: 1, 128>}, {pipeline_mode = #tpu.pipeline_mode<synchronous>, transform_indices = @transform_3, window_bounds = array<i64: 128, 128>}, {pipeline_mode = #tpu.pipeline_mode<synchronous>, transform_indices = @transform_4, window_bounds = array<i64: 1, 128>}, {pipeline_mode = #tpu.pipeline_mode<synchronous>, transform_indices = @transform_5, window_bounds = array<i64: 128, 128>}, {pipeline_mode = #tpu.pipeline_mode<synchronous>, transform_indices = @transform_6, window_bounds = array<i64: 1, 128>}, {pipeline_mode = #tpu.pipeline_mode<synchronous>, transform_indices = @transform_7, window_bounds = array<i64: 128, 1024>}, {pipeline_mode = #tpu.pipeline_mode<synchronous>, transform_indices = @transform_8, window_bounds = array<i64: 1, 1024>}, {transform_indices = @transform_9, window_bounds = array<i64: 16, 128>}, {transform_indices = @transform_10, window_bounds = array<i64: 16, 1024>}, {transform_indices = @transform_11, window_bounds = array<i64: 16, 128>}]} {
    %c0 = arith.constant 0 : index
    %c0_0 = arith.constant 0 : index
    %0 = vector.load %arg1[%c0, %c0_0] : memref<16x1024xbf16, #tpu.memory_space<vmem>>, vector<16x1024xbf16>
    %c0_1 = arith.constant 0 : index
    %c0_2 = arith.constant 0 : index
    %1 = vector.load %arg2[%c0_1, %c0_2] : memref<1024x128xbf16, #tpu.memory_space<vmem>>, vector<1024x128xbf16>
    %cst = arith.constant dense<0.000000e+00> : vector<16x128xf32>
    %2 = tpu.matmul %0, %1, %cst {dimension_numbers = #tpu.dot_dimension_numbers<[1], [0], [0], [1], [0, 0, 1, 1], [], []>} : vector<16x1024xbf16>, vector<1024x128xbf16>, vector<16x128xf32> -> vector<16x128xf32>
    %c0_3 = arith.constant 0 : index
    %c0_4 = arith.constant 0 : index
    %3 = vector.load %arg3[%c0_3, %c0_4] : memref<1x128xf32, #tpu.memory_space<vmem>>, vector<1x128xf32>
    %4 = vector.broadcast %3 : vector<1x128xf32> to vector<16x128xf32>
    %5 = arith.addf %2, %4 : vector<16x128xf32>
    %cst_5 = arith.constant 0.000000e+00 : f32
    %6 = vector.broadcast %cst_5 : f32 to vector<16x128xf32>
    %7 = arith.maximumf %5, %6 : vector<16x128xf32>
    %8 = arith.truncf %7 : vector<16x128xf32> to vector<16x128xbf16>
    %c0_6 = arith.constant 0 : index
    %c0_7 = arith.constant 0 : index
    %9 = vector.load %arg4[%c0_6, %c0_7] : memref<128x128xbf16, #tpu.memory_space<vmem>>, vector<128x128xbf16>
    %cst_8 = arith.constant dense<0.000000e+00> : vector<16x128xf32>
    %10 = tpu.matmul %8, %9, %cst_8 {dimension_numbers = #tpu.dot_dimension_numbers<[1], [0], [0], [1], [0, 0, 1, 1], [], []>} : vector<16x128xbf16>, vector<128x128xbf16>, vector<16x128xf32> -> vector<16x128xf32>
    %c0_9 = arith.constant 0 : index
    %c0_10 = arith.constant 0 : index
    %11 = vector.load %arg5[%c0_9, %c0_10] : memref<1x128xf32, #tpu.memory_space<vmem>>, vector<1x128xf32>
    %12 = vector.broadcast %11 : vector<1x128xf32> to vector<16x128xf32>
    %13 = arith.addf %10, %12 : vector<16x128xf32>
    %c0_11 = arith.constant 0 : index
    %c0_12 = arith.constant 0 : index
    %14 = vector.load %arg12[%c0_11, %c0_12] : memref<16x128xf32, #tpu.memory_space<vmem>>, vector<16x128xf32>
    tpu.vector_store %arg12[%c0_11, %c0_12], %13 {strides = array<i32>} : memref<16x128xf32, #tpu.memory_space<vmem>>, vector<16x128xf32>,
    %c64_i32 = arith.constant 64 : i32
    %15 = tpu.dynamic_rotate %13 by %c64_i32 dim 1 : vector<16x128xf32>, i32 -> vector<16x128xf32>
    %cst_13 = arith.constant 1.700000e+02 : f32
    %16 = vector.broadcast %cst_13 : f32 to vector<16x128xf32>
    %17 = arith.minimumf %15, %16 : vector<16x128xf32>
    %cst_14 = arith.constant 5.000000e-01 : f32
    %18 = vector.broadcast %cst_14 : f32 to vector<16x128xf32>
    %19 = arith.mulf %18, %17 : vector<16x128xf32>
    %20 = math.exp %19 : vector<16x128xf32>
    %c0_15 = arith.constant 0 : index
    %c0_16 = arith.constant 0 : index
    %21 = vector.load %arg10[%c0_15, %c0_16] : memref<16x128xf32, #tpu.memory_space<vmem>>, vector<16x128xf32>
    %22 = arith.mulf %20, %21 : vector<16x128xf32>
    %23 = arith.addf %13, %22 : vector<16x128xf32>
    %24 = arith.truncf %23 : vector<16x128xf32> to vector<16x128xbf16>
    %c0_17 = arith.constant 0 : index
    %c0_18 = arith.constant 0 : index
    %25 = vector.load %arg6[%c0_17, %c0_18] : memref<128x128xbf16, #tpu.memory_space<vmem>>, vector<128x128xbf16>
    %cst_19 = arith.constant dense<0.000000e+00> : vector<16x128xf32>
    %26 = tpu.matmul %24, %25, %cst_19 {dimension_numbers = #tpu.dot_dimension_numbers<[1], [0], [0], [1], [0, 0, 1, 1], [], []>} : vector<16x128xbf16>, vector<128x128xbf16>, vector<16x128xf32> -> vector<16x128xf32>
    %c0_20 = arith.constant 0 : index
    %c0_21 = arith.constant 0 : index
    %27 = vector.load %arg7[%c0_20, %c0_21] : memref<1x128xf32, #tpu.memory_space<vmem>>, vector<1x128xf32>
    %28 = vector.broadcast %27 : vector<1x128xf32> to vector<16x128xf32>
    %29 = arith.addf %26, %28 : vector<16x128xf32>
    %cst_22 = arith.constant 0.000000e+00 : f32
    %30 = vector.broadcast %cst_22 : f32 to vector<16x128xf32>
    %31 = arith.maximumf %29, %30 : vector<16x128xf32>
    %32 = arith.truncf %31 : vector<16x128xf32> to vector<16x128xbf16>
    %c0_23 = arith.constant 0 : index
    %c0_24 = arith.constant 0 : index
    %33 = vector.load %arg8[%c0_23, %c0_24] : memref<128x1024xbf16, #tpu.memory_space<vmem>>, vector<128x1024xbf16>
    %cst_25 = arith.constant dense<0.000000e+00> : vector<16x1024xf32>
    %34 = tpu.matmul %32, %33, %cst_25 {dimension_numbers = #tpu.dot_dimension_numbers<[1], [0], [0], [1], [0, 0, 1, 1], [], []>} : vector<16x128xbf16>, vector<128x1024xbf16>, vector<16x1024xf32> -> vector<16x1024xf32>
    %c0_26 = arith.constant 0 : index
    %c0_27 = arith.constant 0 : index
    %35 = vector.load %arg9[%c0_26, %c0_27] : memref<1x1024xf32, #tpu.memory_space<vmem>>, vector<1x1024xf32>
    %36 = vector.broadcast %35 : vector<1x1024xf32> to vector<16x1024xf32>
    %37 = arith.addf %34, %36 : vector<16x1024xf32>
    %38 = arith.negf %37 : vector<16x1024xf32>
    %39 = math.exp %38 : vector<16x1024xf32>
    %cst_28 = arith.constant 1.000000e+00 : f32
    %40 = vector.broadcast %cst_28 : f32 to vector<16x1024xf32>
    %41 = arith.addf %40, %39 : vector<16x1024xf32>
    %42 = arith.divf %40, %41 : vector<16x1024xf32>
    %43 = arith.truncf %42 : vector<16x1024xf32> to vector<16x1024xbf16>
    %c0_29 = arith.constant 0 : index
    %c0_30 = arith.constant 0 : index
    %44 = vector.load %arg11[%c0_29, %c0_30] : memref<16x1024xbf16, #tpu.memory_space<vmem>>, vector<16x1024xbf16>
    tpu.vector_store %arg11[%c0_29, %c0_30], %43 {strides = array<i32>} : memref<16x1024xbf16, #tpu.memory_space<vmem>>, vector<16x1024xbf16>,
    return
  }
  func.func @transform_0(%arg0: i32) -> (i32, i32) {
    %c0_i32 = arith.constant 0 : i32
    %c0_i32_0 = arith.constant 0 : i32
    return %arg0, %c0_i32 : i32, i32
  }
  func.func @transform_1(%arg0: i32) -> (i32, i32) {
    %c0_i32 = arith.constant 0 : i32
    %c0_i32_0 = arith.constant 0 : i32
    %c0_i32_1 = arith.constant 0 : i32
    return %c0_i32, %c0_i32_0 : i32, i32
  }
  func.func @transform_2(%arg0: i32) -> (i32, i32) {
    %c0_i32 = arith.constant 0 : i32
    %c0_i32_0 = arith.constant 0 : i32
    %c0_i32_1 = arith.constant 0 : i32
    return %c0_i32, %c0_i32_0 : i32, i32
  }
  func.func @transform_3(%arg0: i32) -> (i32, i32) {
    %c0_i32 = arith.constant 0 : i32
    %c0_i32_0 = arith.constant 0 : i32
    %c0_i32_1 = arith.constant 0 : i32
    return %c0_i32, %c0_i32_0 : i32, i32
  }
  func.func @transform_4(%arg0: i32) -> (i32, i32) {
    %c0_i32 = arith.constant 0 : i32
    %c0_i32_0 = arith.constant 0 : i32
    %c0_i32_1 = arith.constant 0 : i32
    return %c0_i32, %c0_i32_0 : i32, i32
  }
  func.func @transform_5(%arg0: i32) -> (i32, i32) {
    %c0_i32 = arith.constant 0 : i32
    %c0_i32_0 = arith.constant 0 : i32
    %c0_i32_1 = arith.constant 0 : i32
    return %c0_i32, %c0_i32_0 : i32, i32
  }
  func.func @transform_6(%arg0: i32) -> (i32, i32) {
    %c0_i32 = arith.constant 0 : i32
    %c0_i32_0 = arith.constant 0 : i32
    %c0_i32_1 = arith.constant 0 : i32
    return %c0_i32, %c0_i32_0 : i32, i32
  }
  func.func @transform_7(%arg0: i32) -> (i32, i32) {
    %c0_i32 = arith.constant 0 : i32
    %c0_i32_0 = arith.constant 0 : i32
    %c0_i32_1 = arith.constant 0 : i32
    return %c0_i32, %c0_i32_0 : i32, i32
  }
  func.func @transform_8(%arg0: i32) -> (i32, i32) {
    %c0_i32 = arith.constant 0 : i32
    %c0_i32_0 = arith.constant 0 : i32
    %c0_i32_1 = arith.constant 0 : i32
    return %c0_i32, %c0_i32_0 : i32, i32
  }
  func.func @transform_9(%arg0: i32) -> (i32, i32) {
    %c0_i32 = arith.constant 0 : i32
    %c0_i32_0 = arith.constant 0 : i32
    return %arg0, %c0_i32 : i32, i32
  }
  func.func @transform_10(%arg0: i32) -> (i32, i32) {
    %c0_i32 = arith.constant 0 : i32
    %c0_i32_0 = arith.constant 0 : i32
    return %arg0, %c0_i32 : i32, i32
  }
  func.func @transform_11(%arg0: i32) -> (i32, i32) {
    %c0_i32 = arith.constant 0 : i32
    %c0_i32_0 = arith.constant 0 : i32
    return %arg0, %c0_i32 : i32, i32
  }
}

</mosaic_0001>

<bundles_post_ra>
// kernel: image_vae_forward.1
= control target key start
LH: loop header
LB: loop body
LE: loop exit
PB: predicated region body
PF: predicated region fallthrough
CT: control target
= control target key end

     0   :  { %17 = vsyncpa [#allocation3], 0  ;;  %s3220_s0 = inlined_call_operand.vmem [shape: bf16[32,1024], index: 0, kind: input, shape index: {}]   ;;  %s3221_s1 = inlined_call_operand.hbm [shape: bf16[1024,128], index: 1, kind: input, shape index: {}]   ;;  %s3222_s2 = inlined_call_operand.vmem [shape: f32[1,128], index: 2, kind: input, shape index: {}]   ;;  %s3223_s3 = inlined_call_operand.vmem [shape: bf16[128,128], index: 3, kind: input, shape index: {}]   ;;  %s3224_s4 = inlined_call_operand.vmem [shape: f32[1,128], index: 4, kind: input, shape index: {}]   ;;  %s3225_s5 = inlined_call_operand.vmem [shape: bf16[128,128], index: 5, kind: input, shape index: {}]   ;;  %s3226_s6 = inlined_call_operand.vmem [shape: f32[1,128], index: 6, kind: input, shape index: {}]   ;;  %s3227_s7 = inlined_call_operand.hbm [shape: bf16[128,1024], index: 7, kind: input, shape index: {}]   ;;  %s3228_s8 = inlined_call_operand.vmem [shape: f32[1,1024], index: 8, kind: input, shape index: {}]   ;;  %s3229_s9 = inlined_call_operand.vmem [shape: f32[32,128], index: 9, kind: input, shape index: {}]   ;;  %s3230_s10 = inlined_call_operand.vmem [shape: bf16[32,1024], index: 10, kind: output, shape index: {0}]   ;;  %s3231_s11 = inlined_call_operand.vmem [shape: f32[32,128], index: 11, kind: output, shape index: {1}]  }
   0x1   :  { %18 = vsyncpa [#allocation5], 0  ;;  %s2999_s17 = smov 0  }
   0x2 LB: > { %s2929_s18 = smov [#allocation2]   ;;  %s2320_s20 = sadd.s32 4294967295, %s2927_s17   ;;  %s2927_s17 = sphi %s2999_s17, %s24_s17  }
   0x3   : > { %s313_s19 = sshll.u32 %s2929_s18, 4  ;;  %p2322_p0 = scmp.ge.s32.totalorder %s2927_s17, 1  ;;  %s314_s19 = int_to_ptr.vmem [resolvable:$true] %s313_s19 }
   0x4   : > { %p301_p1 = scmp.lt.s32.totalorder %s2927_s17, 3  ;;  %p3013_p3 = scmp.eq.s32.totalorder %s2320_s20, 0 }
   0x5   : > { %s2930_s23 = smov [#allocation4]   ;;  %s2872_s26 = scalar_lea.vmem %s314_s19, 8192 }
   0x6   : > { %p3007_p2 = pnand %p2322_p0, %p301_p1  ;;  %s341_s24 = sshll.u32 %s2930_s23, 4  ;;  %s342_s24 = int_to_ptr.vmem [resolvable:$true] %s341_s24 }
   0x7   : > { %p2873_p7 = scmp.ne.s32.totalorder %s314_s19, %s2872_s26  ;;  %p2880_p10 = scmp.lt.s32.totalorder %s314_s19, %s314_s19 }
   0x8   : > { %p2684_p4 = pneg %p3007_p2  ;;  %p2881_p11 = scmp.lt.s32.totalorder %s2872_s26, %s2872_s26 }
   0xa   : > { %p3021_p5 = pnand %p3013_p3, %p2684_p4  ;;  %p2882_p12 = por %p2881_p11, %p2880_p10 }
   0xc   : > { %p2863_p6 = pneg %p3021_p5 }
   0xe   : > { %p2875_p8 = pnand %p2873_p7, %p2863_p6 }
  0x10   : > { %p2876_p9 = pneg %p2875_p8 }
  0x12   : > { %p2883_p13 = pnand %p2882_p12, %p2876_p9 }
  0x14   : > { %2886 = shalt.err (!%p2883_p13)
}
  0x15   : > { %s2931_s27 = smov 64   ;;  %s2932_s28 = smov 4  }
  0x16   : > { %2687 = dma.hbm_to_vmem [thread:$0]  (!%p3021_p5), %s3221_s1, 8192, %s314_s19, [#allocation3], %s2931_s27, %s2931_s27, %s2932_s28  }
  0x17   : > { %s2898_s12 = scalar_lea.vmem %s342_s24, 8192  ;;  %p2906_p7 = scmp.lt.s32.totalorder %s342_s24, %s342_s24 }
  0x18   : > { %p2899_p0 = scmp.ne.s32.totalorder %s342_s24, %s2898_s12  ;;  %p2907_p8 = scmp.lt.s32.totalorder %s2898_s12, %s2898_s12 }
  0x1a   : > { %p2901_p1 = pnand %p2899_p0, %p2863_p6  ;;  %p2908_p10 = por %p2907_p8, %p2906_p7 }
  0x1c   : > { %p2902_p4 = pneg %p2901_p1 }
  0x1e   : > { %p2909_p9 = pnand %p2908_p10, %p2902_p4 }
  0x20   : > { %2912 = shalt.err (!%p2909_p9)
}
  0x21   : > { %s2933_s13 = smov 512   ;;  %s2934_s14 = smov 32  }
  0x22   : > { %2690 = dma.hbm_to_vmem [thread:$0]  (!%p3021_p5), %s3227_s7, 8192, %s342_s24, [#allocation5], %s2933_s13, %s2933_s13, %s2934_s14  }
  0x23   : > { %379 = sbr.rel (%p3007_p2) target bundleno = 1130 (0x46a), region = 60 }
  0x28   : > { %2918 = dma.done.wait (%p3013_p3), [#allocation3], 8192  }
  0x29   : > { %2920 = vsyncadd (%p3013_p3), [#allocation3], 4294959104 }
  0x2a   : > { %2922 = dma.done.wait (%p3013_p3), [#allocation5], 8192  }
  0x2b   : > { %2924 = vsyncadd (%p3013_p3), [#allocation5], 4294959104  ;;  %v2713_v0 = vld [vmem:[#allocation2 + $0x78] sm:$0xff]   ;;  %v2717_v4 = vld [vmem:[#allocation2 + $0x70] sm:$0xff]   ;;  %s2329_s18 = sshll.u32 %s2320_s20, 1  ;;  %vm2936_vm0 = vmmov 0  }
  0x2c   : > { %v2714_v1 = vld [vmem:[#allocation2 + $0xf8] sm:$0xff]   ;;  %2530 = vmatprep.subr.bf16.mxu0 %v2713_v0  ;;  %v2718_v5 = vld [vmem:[#allocation2 + $0xf0] sm:$0xff]   ;;  %v2721_v8 = vld [vmem:[#allocation2 + $0x68] sm:$0xff]   ;;  %p436_p2 = scmp.lt.s32.totalorder %s2329_s18, 3  ;;  %s2937_s25 = smov 64  }
  0x2d   : > { %v2715_v2 = vld [vmem:[#allocation2 + $0x38] sm:$0xff]   ;;  %2552 = vmatprep.subr.bf16.mxu1 %v2714_v1  ;;  %v2719_v6 = vld [vmem:[#allocation2 + $0x30] sm:$0xff]   ;;  %v2722_v9 = vld [vmem:[#allocation2 + $0xe8] sm:$0xff]  }
  0x2e   : > { %v2716_v3 = vld [vmem:[#allocation2 + $0xb8] sm:$0xff]   ;;  %2531 = vmatpush3.bf16.msra.mxu0 %v2715_v2  ;;  %v2720_v7 = vld [vmem:[#allocation2 + $0xb0] sm:$0xff]   ;;  %v2723_v10 = vld [vmem:[#allocation2 + $0x28] sm:$0xff]   ;;  %s3236_s18 = smov (!%p436_p2, %s2329_s18), 3 }
  0x2f   : > { %2553 = vmatpush3.bf16.msra.mxu1 %v2716_v3  ;;  %2532 = vmatprep.subr.bf16.mxu0 %v2717_v4  ;;  %v2724_v11 = vld [vmem:[#allocation2 + $0xa8] sm:$0xff]   ;;  %v2725_v12 = vld [vmem:[#allocation2 + $0x60] sm:$0xff]   ;;  %v2729_v16 = vld [vmem:[#allocation2 + $0x58] sm:$0xff]   ;;  %s2520_s19 = sshll.u32 %s3236_s18, 5  ;;  %s2333_s12 = sshll.u32 %s3236_s18, 3 }
  0x30   : > { %2554 = vmatprep.subr.bf16.mxu1 %v2718_v5  ;;  %v2726_v13 = vld [vmem:[#allocation2 + $0xe0] sm:$0xff]   ;;  %v2730_v17 = vld [vmem:[#allocation2 + $0xd8] sm:$0xff]   ;;  %v2733_v20 = vld [vmem:[#allocation2 + $0x50] sm:$0xff]   ;;  %s3063_s22 = scalar_lea.vmem %s3220_s0, %s2520_s19  ;;  %s459_s20 = scalar_lea.vmem %s3231_s11, %s2333_s12 }
  0x31   : > { %v2727_v14 = vld [vmem:[#allocation2 + $0x20] sm:$0xff]   ;;  %v2731_v18 = vld [vmem:[#allocation2 + $0x18] sm:$0xff]   ;;  %v2734_v21 = vld [vmem:[#allocation2 + $0xd0] sm:$0xff]   ;;  %s446_s16 = scalar_lea.vmem %s3229_s9, %s2333_s12 }
  0x32   : > { %2533 = vmatpush3.bf16.msra.mxu0 %v2719_v6  ;;  %v2728_v15 = vld [vmem:[#allocation2 + $0xa0] sm:$0xff]   ;;  %v2732_v19 = vld [vmem:[#allocation2 + $0x98] sm:$0xff]   ;;  %v2735_v22 = vld [vmem:[#allocation2 + $0x10] sm:$0xff]  }
  0x33   : > { %2555 = vmatpush3.bf16.msra.mxu1 %v2720_v7  ;;  %2534 = vmatprep.subr.bf16.mxu0 %v2721_v8  ;;  %v2736_v23 = vld [vmem:[#allocation2 + $0x90] sm:$0xff]   ;;  %v2737_v24 = vld [vmem:[#allocation2 + $0x48] sm:$0xff]   ;;  %v2741_v28 = vld [vmem:[#allocation2 + $0x40] sm:$0xff]  }
  0x34   : > { %2556 = vmatprep.subr.bf16.mxu1 %v2722_v9  ;;  %v2738_v25 = vld [vmem:[#allocation2 + $0xc8] sm:$0xff]   ;;  %v2742_v29 = vld [vmem:[#allocation2 + $0xc0] sm:$0xff]   ;;  %v2745_v40 = vld [vmem:[#allocation2 + $0x178] sm:$0xff]  }
  0x35   : > { %v2739_v26 = vld [vmem:[#allocation2 + $0x8] sm:$0xff]   ;;  %v2743_v30 = vld [vmem:[#allocation2] sm:$0xff]   ;;  %v2746_v41 = vld [vmem:[#allocation2 + $0x1f8] sm:$0xff]  }
  0x36   : > { %2535 = vmatpush3.bf16.msra.mxu0 %v2723_v10  ;;  %v2740_v27 = vld [vmem:[#allocation2 + $0x88] sm:$0xff]   ;;  %v2744_v31 = vld [vmem:[#allocation2 + $0x80] sm:$0xff]   ;;  %v2747_v42 = vld [vmem:[#allocation2 + $0x138] sm:$0xff]  }
  0x37   : > { %2557 = vmatpush3.bf16.msra.mxu1 %v2724_v11  ;;  %2536 = vmatprep.subr.bf16.mxu0 %v2725_v12  ;;  %v462_v32 = vld [vmem:[%s3063_s22] sm:$0xff]  ;;  %v463_v34 = vld [vmem:[%s3063_s22 + $0x8] sm:$0xff]  ;;  %v2748_v43 = vld [vmem:[#allocation2 + $0x1b8] sm:$0xff]  }
  0x38   : > { %2558 = vmatprep.subr.bf16.mxu1 %v2726_v13  ;;  %v466_v33 = vld [vmem:[%s3063_s22 + $0x20] sm:$0xff]  ;;  %v467_v37 = vld [vmem:[%s3063_s22 + $0x28] sm:$0xff]  ;;  %v2749_v44 = vld [vmem:[#allocation2 + $0x170] sm:$0xff]  }
  0x39   : > { %v2340_v35 = vcombine.low %v462_v32, %v466_v33  ;;  %v2341_v36 = vcombine.high %v462_v32, %v466_v33  ;;  %v2342_v38 = vcombine.low %v463_v34, %v467_v37  ;;  %v2343_v39 = vcombine.high %v463_v34, %v467_v37  ;;  %v2750_v45 = vld [vmem:[#allocation2 + $0x1f0] sm:$0xff]   ;;  %v2753_v48 = vld [vmem:[#allocation2 + $0x168] sm:$0xff]   ;;  %v2757_v52 = vld [vmem:[#allocation2 + $0x160] sm:$0xff]  }
  0x3a   : > { %2537 = vmatpush3.bf16.msra.mxu0 %v2727_v14  ;;  %v2751_v46 = vld [vmem:[#allocation2 + $0x130] sm:$0xff]   ;;  %v2754_v49 = vld [vmem:[#allocation2 + $0x1e8] sm:$0xff]   ;;  %v2758_v53 = vld [vmem:[#allocation2 + $0x1e0] sm:$0xff]  }
  0x3b   : > { %2559 = vmatpush3.bf16.msra.mxu1 %v2728_v15  ;;  %2538 = vmatprep.subr.bf16.mxu0 %v2729_v16  ;;  %v2752_v47 = vld [vmem:[#allocation2 + $0x1b0] sm:$0xff]   ;;  %v2755_v50 = vld [vmem:[#allocation2 + $0x128] sm:$0xff]   ;;  %v2759_v54 = vld [vmem:[#allocation2 + $0x120] sm:$0xff]  }
  0x3c   : > { %2560 = vmatprep.subr.bf16.mxu1 %v2730_v17  ;;  %1061 = vmatprep.mubr.bf16.mxu0 %v2341_v36  ;;  %v2756_v51 = vld [vmem:[#allocation2 + $0x1a8] sm:$0xff]   ;;  %v2760_v55 = vld [vmem:[#allocation2 + $0x1a0] sm:$0xff]   ;;  %v2761_v56 = vld [vmem:[#allocation2 + $0x158] sm:$0xff]   ;;  %v2935_v17 = vmov 0.0  }
  0x3d   : > { %1102 = vmatprep.mubr.bf16.mxu1 %v2343_v39  ;;  %v2762_v57 = vld [vmem:[#allocation2 + $0x1d8] sm:$0xff]   ;;  %v2765_v60 = vld [vmem:[#allocation2 + $0x150] sm:$0xff]   ;;  %v2769_v0 = vld [vmem:[#allocation2 + $0x148] sm:$0xff]  }
  0x3e   : > { %2539 = vmatpush3.bf16.msra.mxu0 %v2731_v18  ;;  %v2763_v58 = vld [vmem:[#allocation2 + $0x118] sm:$0xff]   ;;  %v2766_v61 = vld [vmem:[#allocation2 + $0x1d0] sm:$0xff]   ;;  %v2770_v1 = vld [vmem:[#allocation2 + $0x1c8] sm:$0xff]  }
  0x3f   : > { %2561 = vmatpush3.bf16.msra.mxu1 %v2732_v19  ;;  %2540 = vmatprep.subr.bf16.mxu0 %v2733_v20  ;;  %v2764_v59 = vld [vmem:[#allocation2 + $0x198] sm:$0xff]   ;;  %v2767_v62 = vld [vmem:[#allocation2 + $0x110] sm:$0xff]   ;;  %v2771_v2 = vld [vmem:[#allocation2 + $0x108] sm:$0xff]  }
  0x40   : > { %2562 = vmatprep.subr.bf16.mxu1 %v2734_v21  ;;  %v2768_v63 = vld [vmem:[#allocation2 + $0x190] sm:$0xff]   ;;  %v2772_v3 = vld [vmem:[#allocation2 + $0x188] sm:$0xff]   ;;  %v2773_v4 = vld [vmem:[#allocation2 + $0x140] sm:$0xff]  }
  0x41   : > { %v2774_v5 = vld [vmem:[#allocation2 + $0x1c0] sm:$0xff]   ;;  %v464_v8 = vld [vmem:[%s3063_s22 + $0x10] sm:$0xff]  ;;  %v465_v12 = vld [vmem:[%s3063_s22 + $0x18] sm:$0xff] }
  0x42   : > { %2541 = vmatpush3.bf16.msra.mxu0 %v2735_v22  ;;  %v2775_v6 = vld [vmem:[#allocation2 + $0x100] sm:$0xff]   ;;  %v468_v9 = vld [vmem:[%s3063_s22 + $0x30] sm:$0xff]  ;;  %v469_v13 = vld [vmem:[%s3063_s22 + $0x38] sm:$0xff] }
  0x43   : > { %2563 = vmatpush3.bf16.msra.mxu1 %v2736_v23  ;;  %2542 = vmatprep.subr.bf16.mxu0 %v2737_v24  ;;  %v2776_v7 = vld [vmem:[#allocation2 + $0x180] sm:$0xff]   ;;  %v2344_v10 = vcombine.low %v464_v8, %v468_v9  ;;  %v2345_v11 = vcombine.high %v464_v8, %v468_v9  ;;  %v2346_v14 = vcombine.low %v465_v12, %v469_v13  ;;  %v2777_v16 = vld [vmem:[%s3223_s3 + $0x38] sm:$0xff]   ;;  %v2778_v18 = vld [vmem:[%s3223_s3 + $0x30] sm:$0xff]  }
  0x44   : > { %2564 = vmatprep.subr.bf16.mxu1 %v2738_v25  ;;  %v2347_v15 = vcombine.high %v465_v12, %v469_v13  ;;  %v2779_v19 = vld [vmem:[%s3223_s3 + $0x28] sm:$0xff]   ;;  %v2780_v20 = vld [vmem:[%s3223_s3 + $0x20] sm:$0xff]   ;;  %v2781_v21 = vld [vmem:[%s3223_s3 + $0x18] sm:$0xff]  }
  0x45   : > { %v2782_v22 = vld [vmem:[%s3223_s3 + $0x10] sm:$0xff]   ;;  %v2783_v23 = vld [vmem:[%s3223_s3 + $0x8] sm:$0xff]   ;;  %v2784_v24 = vld [vmem:[%s3223_s3] sm:$0xff]  }
  0x46   : > { %2543 = vmatpush3.bf16.msra.mxu0 %v2739_v26  ;;  %v2339_v32 = vld [vmem:[%s3222_s2] ss:$0 sm:$0xff]  ;;  %v2790_v9 = vld [vmem:[%s3225_s5 + $0x10] sm:$0xff]  }
  0x47   : > { %2565 = vmatpush3.bf16.msra.mxu1 %v2740_v27  ;;  %2544 = vmatprep.subr.bf16.mxu0 %v2741_v28  ;;  %v1500_v12 = vld [vmem:[#allocation4 + $0x1c0] sm:$0xff] }
  0x48   : > { %2566 = vmatprep.subr.bf16.mxu1 %v2742_v29  ;;  %v1504_v13 = vld [vmem:[#allocation4 + $0x1e0] sm:$0xff] }
  0x4a   : > { %2545 = vmatpush3.bf16.msra.mxu0 %v2743_v30 }
  0x4b   : > { %2567 = vmatpush3.bf16.msra.mxu1 %v2744_v31  ;;  %2574 = vmatprep.subr.bf16.mxu0 %v2745_v40 }
  0x4c   : > { %2596 = vmatprep.subr.bf16.mxu1 %v2746_v41 }
  0x4d   : > { %1062 = vmatmul.mubr.bf16.vlgmr.msra.gmra.mxu0 %v2340_v35 }
  0x4e   : > { %1103 = vmatmul.mubr.bf16.vlgmr.msra.gmra.mxu1 %v2342_v38  ;;  %2575 = vmatpush3.bf16.msra.mxu0 %v2747_v42 }
  0x4f   : > { %2597 = vmatpush3.bf16.msra.mxu1 %v2748_v43  ;;  %2576 = vmatprep.subr.bf16.mxu0 %v2749_v44 }
  0x50   : > { %2598 = vmatprep.subr.bf16.mxu1 %v2750_v45  ;;  %1143 = vmatprep.mubr.bf16.mxu0 %v2345_v11  ;;  %v2792_v11 = vld [vmem:[%s3225_s5] sm:$0xff]  }
  0x51   : > { %1184 = vmatprep.mubr.bf16.mxu1 %v2347_v15  ;;  %v2486_v15 = vcombine.low %v1500_v12, %v1504_v13 }
  0x52   : > { %2577 = vmatpush3.bf16.msra.mxu0 %v2751_v46 }
  0x53   : > { %2599 = vmatpush3.bf16.msra.mxu1 %v2752_v47  ;;  %2578 = vmatprep.subr.bf16.mxu0 %v2753_v48 }
  0x54   : > { %2600 = vmatprep.subr.bf16.mxu1 %v2754_v49 }
  0x56   : > { %2579 = vmatpush3.bf16.msra.mxu0 %v2755_v50 }
  0x57   : > { %2601 = vmatpush3.bf16.msra.mxu1 %v2756_v51  ;;  %2580 = vmatprep.subr.bf16.mxu0 %v2757_v52 }
  0x58   : > { %2602 = vmatprep.subr.bf16.mxu1 %v2758_v53 }
  0x5a   : > { %2581 = vmatpush3.bf16.msra.mxu0 %v2759_v54 }
  0x5b   : > { %2603 = vmatpush3.bf16.msra.mxu1 %v2760_v55  ;;  %2582 = vmatprep.subr.bf16.mxu0 %v2761_v56 }
  0x5c   : > { %2604 = vmatprep.subr.bf16.mxu1 %v2762_v57 }
  0x5e   : > { %2583 = vmatpush3.bf16.msra.mxu0 %v2763_v58 }
  0x5f   : > { %2605 = vmatpush3.bf16.msra.mxu1 %v2764_v59  ;;  %2584 = vmatprep.subr.bf16.mxu0 %v2765_v60 }
  0x60   : > { %2606 = vmatprep.subr.bf16.mxu1 %v2766_v61  ;;  %v2785_v61 = vld [vmem:[%s3225_s5 + $0x38] sm:$0xff]  }
  0x62   : > { %2585 = vmatpush3.bf16.msra.mxu0 %v2767_v62  ;;  %v2786_v62 = vld [vmem:[%s3225_s5 + $0x30] sm:$0xff]  }
  0x63   : > { %2607 = vmatpush3.bf16.msra.mxu1 %v2768_v63  ;;  %2586 = vmatprep.subr.bf16.mxu0 %v2769_v0  ;;  %v2787_v63 = vld [vmem:[%s3225_s5 + $0x28] sm:$0xff]   ;;  %v2412_v0 = vld [vmem:[%s3224_s4] ss:$0 sm:$0xff] }
  0x64   : > { %2608 = vmatprep.subr.bf16.mxu1 %v2770_v1 }
  0x66   : > { %2587 = vmatpush3.bf16.msra.mxu0 %v2771_v2  ;;  %v2788_v2 = vld [vmem:[%s3225_s5 + $0x20] sm:$0xff]  }
  0x67   : > { %2609 = vmatpush3.bf16.msra.mxu1 %v2772_v3  ;;  %2588 = vmatprep.subr.bf16.mxu0 %v2773_v4 }
  0x68   : > { %2610 = vmatprep.subr.bf16.mxu1 %v2774_v5  ;;  %v2789_v5 = vld [vmem:[%s3225_s5 + $0x18] sm:$0xff]  }
  0x6a   : > { %2589 = vmatpush3.bf16.msra.mxu0 %v2775_v6 }
  0x6b   : > { %2611 = vmatpush3.bf16.msra.mxu1 %v2776_v7  ;;  %2636 = vmatprep.subr.bf16.mxu0 %v2935_v17 }
  0x6c   : > { %2656 = vmatprep.subr.bf16.mxu1 %v2935_v17 }
  0x6d   : > { %1144 = vmatmul.mubr.bf16.vlgmr.msra.gmra.mxu0 %v2344_v10  ;;  %v2791_v10 = vld [vmem:[%s3225_s5 + $0x8] sm:$0xff]  }
  0x6e   : > { %1185 = vmatmul.mubr.bf16.vlgmr.msra.gmra.mxu1 %v2346_v14  ;;  %2637 = vmatpush3.bf16.msra.mxu0 %v2777_v16  ;;  %v3159_v14 = vld [vmem:[#allocation4 + $0x1c8] sm:$0xff]  ;;  %v2487_v16 = vcombine.high %v1500_v12, %v1504_v13  ;;  %v1452_v13 = vld [vmem:[#allocation4 + $0x40] sm:$0xff] }
  0x6f   : > { %2638 = vmatprep.subr.bf16.mxu0 %v2935_v17  ;;  %2652 = vmatprep.mubr.msk.bf16.mxu0 %vm2936_vm0, %v2935_v17 }
  0x70   : > { %2672 = vmatprep.mubr.msk.bf16.mxu1 %vm2936_vm0, %v2935_v17  ;;  %2657 = vmatpush3.bf16.msra.mxu1 %v2785_v61  ;;  %v1489_v61 = vld [vmem:[#allocation4 + $0x168] sm:$0xff] }
  0x71   : > { %2658 = vmatprep.subr.bf16.mxu1 %v2935_v17 }
  0x72   : > { %2639 = vmatpush3.bf16.msra.mxu0 %v2778_v18  ;;  %v1505_v18 = vld [vmem:[#allocation4 + $0x1e8] sm:$0xff] }
  0x73   : > { %2640 = vmatprep.subr.bf16.mxu0 %v2935_v17 }
  0x74   : > { %2659 = vmatpush3.bf16.msra.mxu1 %v2786_v62 }
  0x75   : > { %2660 = vmatprep.subr.bf16.mxu1 %v2935_v17 }
  0x76   : > { %2641 = vmatpush3.bf16.msra.mxu0 %v2779_v19  ;;  %v1492_v19 = vld [vmem:[#allocation4 + $0x180] sm:$0xff] }
  0x77   : > { %2642 = vmatprep.subr.bf16.mxu0 %v2935_v17 }
  0x78   : > { %2661 = vmatpush3.bf16.msra.mxu1 %v2787_v63 }
  0x79   : > { %2662 = vmatprep.subr.bf16.mxu1 %v2935_v17 }
  0x7a   : > { %2643 = vmatpush3.bf16.msra.mxu0 %v2780_v20  ;;  %v1496_v20 = vld [vmem:[#allocation4 + $0x1a0] sm:$0xff] }
  0x7b   : > { %2644 = vmatprep.subr.bf16.mxu0 %v2935_v17 }
  0x7c   : > { %2663 = vmatpush3.bf16.msra.mxu1 %v2788_v2 }
  0x7d   : > { %2664 = vmatprep.subr.bf16.mxu1 %v2935_v17 }
  0x7e   : > { %2645 = vmatpush3.bf16.msra.mxu0 %v2781_v21  ;;  %v2488_v21 = vcombine.low %v3159_v14, %v1505_v18 }
  0x7f   : > { %2646 = vmatprep.subr.bf16.mxu0 %v2935_v17 }
  0x80   : > { %2665 = vmatpush3.bf16.msra.mxu1 %v2789_v5  ;;  %v1469_v5 = vld [vmem:[#allocation4 + $0xc8] sm:$0xff] }
  0x81   : > { %2666 = vmatprep.subr.bf16.mxu1 %v2935_v17 }
  0x82   : > { %2647 = vmatpush3.bf16.msra.mxu0 %v2782_v22  ;;  %v2489_v22 = vcombine.high %v3159_v14, %v1505_v18  ;;  %v1456_v14 = vld [vmem:[#allocation4 + $0x60] sm:$0xff]  ;;  %v1457_v18 = vld [vmem:[#allocation4 + $0x68] sm:$0xff] }
  0x83   : > { %2648 = vmatprep.subr.bf16.mxu0 %v2935_v17 }
  0x84   : > { %2667 = vmatpush3.bf16.msra.mxu1 %v2790_v9  ;;  %v1465_v9 = vld [vmem:[#allocation4 + $0xa8] sm:$0xff] }
  0x85   : > { %2668 = vmatprep.subr.bf16.mxu1 %v2935_v17 }
  0x86   : > { %2649 = vmatpush3.bf16.msra.mxu0 %v2783_v23  ;;  %v2479_v23 = vcombine.high %v1492_v19, %v1496_v20 }
  0x87   : > { %2650 = vmatprep.subr.bf16.mxu0 %v2935_v17 }
  0x88   : > { %2669 = vmatpush3.bf16.msra.mxu1 %v2791_v10 }
  0x89   : > { %2670 = vmatprep.subr.bf16.mxu1 %v2935_v17  ;;  %v1484_v17 = vld [vmem:[#allocation4 + $0x140] sm:$0xff] }
  0x8a   : > { %2651 = vmatpush3.bf16.msra.mxu0 %v2784_v24  ;;  %v2478_v24 = vcombine.low %v1492_v19, %v1496_v20  ;;  %v2438_v19 = vcombine.low %v1452_v13, %v1456_v14 }
  0x8b   : > { %1870 = vmatprep.subr.bf16.mxu0 %v2487_v16  ;;  %v2439_v16 = vcombine.high %v1452_v13, %v1456_v14  ;;  %v1462_v14 = vld [vmem:[#allocation4 + $0x90] sm:$0xff] }
  0x8c   : > { %2671 = vmatpush3.bf16.msra.mxu1 %v2792_v11 }
  0x8d   : > { %1913 = vmatprep.subr.bf16.mxu1 %v2489_v22  ;;  %v1444_v22 = vld [vmem:[#allocation4] sm:$0xff] }
 0x10d   : > { %v2546_v25 = vpop.f32.mrf.mxu0 }
 0x10e   : > { %v2568_v26 = vpop.f32.mrf.mxu1 }
 0x10f   : > { %v2547_v27 = vpop.f32.mrf.mxu0 }
 0x110   : > { %v2569_v28 = vpop.f32.mrf.mxu1  ;;  %v2548_v30 = vadd.f32 %v2547_v27, %v2546_v25  ;;  %v1488_v25 = vld [vmem:[#allocation4 + $0x160] sm:$0xff] }
 0x111   : > { %v2549_v29 = vpop.f32.mrf.mxu0  ;;  %v2570_v35 = vadd.f32 %v2569_v28, %v2568_v26  ;;  %v2471_v26 = vcombine.high %v1484_v17, %v1488_v25  ;;  %v2470_v27 = vcombine.low %v1484_v17, %v1488_v25  ;;  %v1476_v28 = vld [vmem:[#allocation4 + $0x100] sm:$0xff]  ;;  %v1449_v25 = vld [vmem:[#allocation4 + $0x28] sm:$0xff] }
 0x112   : > { %v2571_v31 = vpop.f32.mrf.mxu1  ;;  %v1064_v34 = vadd.f32 %v2548_v30, %v2339_v32 }
 0x113   : > { %v2550_v33 = vpop.f32.mrf.mxu0 }
 0x114   : > { %v2551_v36 = vadd.f32 %v2550_v33, %v2549_v29  ;;  %v2572_v37 = vpop.f32.mrf.mxu1  ;;  %v1105_v41 = vadd.f32 %v2570_v35, %v1064_v34  ;;  %v1480_v29 = vld [vmem:[#allocation4 + $0x120] sm:$0xff] }
 0x115   : > { %v2573_v46 = vadd.f32 %v2572_v37, %v2571_v31  ;;  %v2463_v30 = vcombine.high %v1476_v28, %v1480_v29  ;;  %v2462_v31 = vcombine.low %v1476_v28, %v1480_v29  ;;  %v1472_v33 = vld [vmem:[#allocation4 + $0xe0] sm:$0xff]  ;;  %v1502_v29 = vld [vmem:[#allocation4 + $0x1d0] sm:$0xff] }
 0x116   : > { %v1067_v42 = vadd.f32 %v2551_v36, %v2339_v32  ;;  %v1468_v32 = vld [vmem:[#allocation4 + $0xc0] sm:$0xff] }
 0x117   : > { %v2455_v34 = vcombine.high %v1468_v32, %v1472_v33  ;;  %v2454_v35 = vcombine.low %v1468_v32, %v1472_v33  ;;  %v1460_v36 = vld [vmem:[#allocation4 + $0x80] sm:$0xff] }
 0x118   : > { %v1108_v50 = vadd.f32 %v2573_v46, %v1067_v42  ;;  %v1464_v37 = vld [vmem:[#allocation4 + $0xa0] sm:$0xff] }
 0x12d   : > { %v2590_v38 = vpop.f32.mrf.mxu0 }
 0x12e   : > { %v2612_v39 = vpop.f32.mrf.mxu1 }
 0x12f   : > { %v2591_v40 = vpop.f32.mrf.mxu0 }
 0x130   : > { %v2592_v43 = vadd.f32 %v2591_v40, %v2590_v38  ;;  %v2613_v44 = vpop.f32.mrf.mxu1  ;;  %v2447_v38 = vcombine.high %v1460_v36, %v1464_v37 }
 0x131   : > { %v2593_v45 = vpop.f32.mrf.mxu0  ;;  %v2614_v51 = vadd.f32 %v2613_v44, %v2612_v39  ;;  %v2446_v39 = vcombine.low %v1460_v36, %v1464_v37 }
 0x132   : > { %v1146_v47 = vadd.f32 %v2592_v43, %v1105_v41  ;;  %v2615_v48 = vpop.f32.mrf.mxu1 }
 0x133   : > { %v2594_v49 = vpop.f32.mrf.mxu0 }
 0x134   : > { %v2595_v52 = vadd.f32 %v2594_v49, %v2593_v45  ;;  %v2616_v53 = vpop.f32.mrf.mxu1  ;;  %v1187_v54 = vadd.f32 %v2614_v51, %v1146_v47  ;;  %v1322_v49 = vld [vmem:[%s446_s16] sm:$0xff] }
 0x135   : > { %v2617_v56 = vadd.f32 %v2616_v53, %v2615_v48 }
 0x136   : > { %v1149_v55 = vadd.f32 %v2595_v52, %v1108_v50  ;;  %v1193_v58 = vmax.f32 %v1187_v54, 0.0  ;;  %v1323_v50 = vld [vmem:[%s446_s16 + $0x8] sm:$0xff] }
 0x137   : > { %v1493_v54 = vld [vmem:[#allocation4 + $0x188] sm:$0xff] }
 0x138   : > { %v1190_v57 = vadd.f32 %v2617_v56, %v1149_v55  ;;  %v1497_v55 = vld [vmem:[#allocation4 + $0x1a8] sm:$0xff] }
 0x139   : > { %v2480_v62 = vcombine.low %v1493_v54, %v1497_v55 }
 0x13a   : > { %v1194_v59 = vmax.f32 %v1190_v57, 0.0 }
 0x13c   : > { %v1195_v60 = vpack.c.bf16 %v1194_v59, %v1193_v58  ;;  %v2481_v59 = vcombine.high %v1493_v54, %v1497_v55  ;;  %v1486_v54 = vld [vmem:[#allocation4 + $0x150] sm:$0xff] }
 0x13d   : > { %v1490_v55 = vld [vmem:[#allocation4 + $0x170] sm:$0xff] }
 0x13e   : > { %2653 = vmatmul.mubr.bf16.vlgmr.msra.gmra.mxu0 %v1195_v60  ;;  %v1485_v60 = vld [vmem:[#allocation4 + $0x148] sm:$0xff] }
 0x13f   : > { %1871 = vmatpush1.bf16.msra.mxu0 %v2486_v15  ;;  %v2473_v63 = vcombine.high %v1485_v60, %v1489_v61  ;;  %v2472_v2 = vcombine.low %v1485_v60, %v1489_v61  ;;  %v1453_v15 = vld [vmem:[#allocation4 + $0x48] sm:$0xff]  ;;  %v2475_v60 = vcombine.high %v1486_v54, %v1490_v55 }
 0x140   : > { %1872 = vmatprep.subr.bf16.mxu0 %v2479_v23  ;;  %v2440_v20 = vcombine.low %v1453_v15, %v1457_v18  ;;  %v1448_v23 = vld [vmem:[#allocation4 + $0x20] sm:$0xff] }
 0x141   : > { %v2431_v17 = vcombine.high %v1444_v22, %v1448_v23 }
 0x143   : > { %1873 = vmatpush1.bf16.msra.mxu0 %v2478_v24  ;;  %v1445_v24 = vld [vmem:[#allocation4 + $0x8] sm:$0xff] }
 0x144   : > { %1874 = vmatprep.subr.bf16.mxu0 %v2471_v26  ;;  %v2430_v26 = vcombine.low %v1444_v22, %v1448_v23  ;;  %v2433_v28 = vcombine.high %v1445_v24, %v1449_v25  ;;  %v1454_v23 = vld [vmem:[#allocation4 + $0x50] sm:$0xff] }
 0x147   : > { %1875 = vmatpush1.bf16.msra.mxu0 %v2470_v27  ;;  %v2432_v27 = vcombine.low %v1445_v24, %v1449_v25  ;;  %v1458_v24 = vld [vmem:[#allocation4 + $0x70] sm:$0xff]  ;;  %v1459_v25 = vld [vmem:[#allocation4 + $0x78] sm:$0xff] }
 0x148   : > { %1876 = vmatprep.subr.bf16.mxu0 %v2463_v30  ;;  %v1506_v30 = vld [vmem:[#allocation4 + $0x1f0] sm:$0xff] }
 0x149   : > { %v2490_v32 = vcombine.low %v1502_v29, %v1506_v30  ;;  %v2491_v33 = vcombine.high %v1502_v29, %v1506_v30  ;;  %v1446_v30 = vld [vmem:[#allocation4 + $0x10] sm:$0xff] }
 0x14b   : > { %1877 = vmatpush1.bf16.msra.mxu0 %v2462_v31  ;;  %v1503_v31 = vld [vmem:[#allocation4 + $0x1d8] sm:$0xff] }
 0x14c   : > { %1878 = vmatprep.subr.bf16.mxu0 %v2455_v34  ;;  %v1507_v34 = vld [vmem:[#allocation4 + $0x1f8] sm:$0xff] }
 0x14d   : > { %v2492_v36 = vcombine.low %v1503_v31, %v1507_v34  ;;  %v2493_v37 = vcombine.high %v1503_v31, %v1507_v34  ;;  %v1450_v31 = vld [vmem:[#allocation4 + $0x30] sm:$0xff]  ;;  %v2442_v34 = vcombine.low %v1454_v23, %v1458_v24 }
 0x14f   : > { %1879 = vmatpush1.bf16.msra.mxu0 %v2454_v35  ;;  %v2938_v35 = vmov 0  }
 0x150   : > { %1880 = vmatprep.subr.bf16.mxu0 %v2447_v38  ;;  %1902 = vmatprep.mubr.bf16.mxu0 %v2938_v35  ;;  %v2421_v38 = vld [vmem:[%s3226_s6] ss:$0 sm:$0xff] }
 0x153   : > { %1881 = vmatpush1.bf16.msra.mxu0 %v2446_v39 }
 0x154   : > { %1882 = vmatprep.subr.bf16.mxu0 %v2439_v16  ;;  %v1463_v16 = vld [vmem:[#allocation4 + $0x98] sm:$0xff] }
 0x157   : > { %1883 = vmatpush1.bf16.msra.mxu0 %v2438_v19 }
 0x158   : > { %1884 = vmatprep.subr.bf16.mxu0 %v2431_v17  ;;  %v1455_v17 = vld [vmem:[#allocation4 + $0x58] sm:$0xff] }
 0x159   : > { %v2445_v29 = vcombine.high %v1455_v17, %v1459_v25 }
 0x15b   : > { %1885 = vmatpush1.bf16.msra.mxu0 %v2430_v26 }
 0x15c   : > { %1956 = vmatprep.subr.bf16.mxu0 %v2491_v33  ;;  %v1451_v33 = vld [vmem:[#allocation4 + $0x38] sm:$0xff] }
 0x1fe   : > { %v1301_v1 = vpop.f32.mrf.mxu0 }
 0x1ff   : > { %v3135_v3 = vadd.f32 %v2412_v0, %v1301_v1  ;;  %v1481_v1 = vld [vmem:[#allocation4 + $0x128] sm:$0xff] }
 0x200   : > { %v2654_v4 = vpop.f32.mrf.mxu0 }
 0x201   : > { %1308 = vst [vmem:[%s459_s20] sm:$0xff] %v3135_v3  ;;  %1310 = vrot.lane.b32.xlu0 %v3135_v3, %s2937_s25 }
 0x202   : > { %v1304_v6 = vpop.f32.mrf.mxu0 }
 0x203   : > { %v3143_v7 = vadd.f32 %v2412_v0, %v1304_v6  ;;  %v1477_v0 = vld [vmem:[#allocation4 + $0x108] sm:$0xff] }
 0x204   : > { %v2655_v8 = vpop.f32.mrf.mxu0  ;;  %v2465_v4 = vcombine.high %v1477_v0, %v1481_v1  ;;  %v1473_v6 = vld [vmem:[#allocation4 + $0xe8] sm:$0xff] }
 0x205   : > { %1309 = vst [vmem:[%s459_s20 + $0x8] sm:$0xff] %v3143_v7  ;;  %1312 = vrot.lane.b32.xlu0 %v3143_v7, %s2937_s25  ;;  %v1461_v8 = vld [vmem:[#allocation4 + $0x88] sm:$0xff]  ;;  %v2456_v10 = vcombine.low %v1469_v5, %v1473_v6  ;;  %s3207_s25 = scalar_lea.vmem %s3230_s10, %s2520_s19 }
 0x206   : > { %v2449_v11 = vcombine.high %v1461_v8, %v1465_v9  ;;  %v2448_v12 = vcombine.low %v1461_v8, %v1465_v9  ;;  %v1471_v8 = vld [vmem:[#allocation4 + $0xd8] sm:$0xff] }
 0x207   : > { %v1475_v9 = vld [vmem:[#allocation4 + $0xf8] sm:$0xff] }
 0x208   : > { %v2461_v13 = vcombine.high %v1471_v8, %v1475_v9 }
 0x273   : > { %v1311_v40 = vpop.permute.xlu0 %1310 }
 0x274   : > { %v1314_v41 = vmin.f32 %v1311_v40, 170.0 }
 0x276   : > { %v1316_v42 = vmul.f32 0.5, %v1314_v41 }
 0x277   : > { %v1313_v43 = vpop.permute.xlu0 %1312 }
 0x278   : > { %v1318_v44 = vmul.f32 1.442695, %v1316_v42  ;;  %v1315_v45 = vmin.f32 %v1313_v43, 170.0 }
 0x27a   : > { %2793 = vpow2.f32 %v1318_v44  ;;  %v1317_v46 = vmul.f32 0.5, %v1315_v45  ;;  %v1494_v44 = vld [vmem:[#allocation4 + $0x190] sm:$0xff] }
 0x27c   : > { %v1320_v47 = vmul.f32 1.442695, %v1317_v46  ;;  %v1498_v46 = vld [vmem:[#allocation4 + $0x1b0] sm:$0xff] }
 0x27e   : > { %2795 = vpow2.f32 %v1320_v47  ;;  %v1495_v47 = vld [vmem:[#allocation4 + $0x198] sm:$0xff] }
 0x287   : > { %v2794_v48 = vpop.eup %2793 }
 0x288   : > { %v1324_v51 = vmul.f32 %v2794_v48, %v1322_v49  ;;  %v1499_v48 = vld [vmem:[#allocation4 + $0x1b8] sm:$0xff] }
 0x28a   : > { %v1326_v56 = vadd.f32 %v1324_v51, %v3135_v3  ;;  %v2464_v3 = vcombine.low %v1477_v0, %v1481_v1  ;;  %v1479_v0 = vld [vmem:[#allocation4 + $0x118] sm:$0xff] }
 0x28b   : > { %v2796_v52 = vpop.eup %2795  ;;  %v1483_v1 = vld [vmem:[#allocation4 + $0x138] sm:$0xff] }
 0x28c   : > { %v1325_v53 = vmul.f32 %v2796_v52, %v1323_v50  ;;  %v2483_v52 = vcombine.high %v1494_v44, %v1498_v46 }
 0x28e   : > { %v1327_v57 = vadd.f32 %v1325_v53, %v3143_v7  ;;  %v2457_v7 = vcombine.high %v1469_v5, %v1473_v6  ;;  %v2485_v53 = vcombine.high %v1495_v47, %v1499_v48  ;;  %v2469_v6 = vcombine.high %v1479_v0, %v1483_v1 }
 0x290   : > { %v1328_v58 = vpack.c.bf16 %v1327_v57, %v1326_v56  ;;  %v1487_v56 = vld [vmem:[#allocation4 + $0x158] sm:$0xff] }
 0x291   : > { %v1491_v57 = vld [vmem:[#allocation4 + $0x178] sm:$0xff] }
 0x292   : > { %2673 = vmatmul.mubr.bf16.vlgmr.msra.gmra.mxu1 %v1328_v58  ;;  %v2482_v58 = vcombine.low %v1494_v44, %v1498_v46  ;;  %v2477_v61 = vcombine.high %v1487_v56, %v1491_v57  ;;  %v3186_v44 = vld [vmem:[%s3228_s8] sm:$0xff] }
 0x293   : > { %1914 = vmatpush1.bf16.msra.mxu1 %v2488_v21  ;;  %v2441_v21 = vcombine.high %v1453_v15, %v1457_v18  ;;  %1945 = vmatprep.mubr.bf16.mxu1 %v2938_v35  ;;  %v1466_v15 = vld [vmem:[#allocation4 + $0xb0] sm:$0xff]  ;;  %v1467_v18 = vld [vmem:[#allocation4 + $0xb8] sm:$0xff] }
 0x294   : > { %1915 = vmatprep.subr.bf16.mxu1 %v2481_v59  ;;  %v2484_v59 = vcombine.low %v1495_v47, %v1499_v48  ;;  %v2453_v22 = vcombine.high %v1463_v16, %v1467_v18  ;;  %v2450_v26 = vcombine.low %v1462_v14, %v1466_v15 }
 0x297   : > { %1916 = vmatpush1.bf16.msra.mxu1 %v2480_v62  ;;  %v1478_v62 = vld [vmem:[#allocation4 + $0x110] sm:$0xff] }
 0x298   : > { %1917 = vmatprep.subr.bf16.mxu1 %v2473_v63  ;;  %v1482_v63 = vld [vmem:[#allocation4 + $0x130] sm:$0xff] }
 0x299   : > { %v2467_v5 = vcombine.high %v1478_v62, %v1482_v63 }
 0x29b   : > { %1918 = vmatpush1.bf16.msra.mxu1 %v2472_v2  ;;  %v2474_v2 = vcombine.low %v1486_v54, %v1490_v55 }
 0x29c   : > { %1919 = vmatprep.subr.bf16.mxu1 %v2465_v4  ;;  %v2476_v4 = vcombine.low %v1487_v56, %v1491_v57 }
 0x29f   : > { %1920 = vmatpush1.bf16.msra.mxu1 %v2464_v3  ;;  %v1470_v3 = vld [vmem:[#allocation4 + $0xd0] sm:$0xff] }
 0x2a0   : > { %1921 = vmatprep.subr.bf16.mxu1 %v2457_v7  ;;  %v1474_v7 = vld [vmem:[#allocation4 + $0xf0] sm:$0xff] }
 0x2a1   : > { %v2458_v19 = vcombine.low %v1470_v3, %v1474_v7 }
 0x2a3   : > { %1922 = vmatpush1.bf16.msra.mxu1 %v2456_v10  ;;  %v2466_v10 = vcombine.low %v1478_v62, %v1482_v63 }
 0x2a4   : > { %1923 = vmatprep.subr.bf16.mxu1 %v2449_v11  ;;  %v2468_v11 = vcombine.low %v1479_v0, %v1483_v1 }
 0x2a7   : > { %1924 = vmatpush1.bf16.msra.mxu1 %v2448_v12  ;;  %v2459_v12 = vcombine.high %v1470_v3, %v1474_v7 }
 0x2a8   : > { %1925 = vmatprep.subr.bf16.mxu1 %v2441_v21  ;;  %v2451_v21 = vcombine.high %v1462_v14, %v1466_v15 }
 0x2ab   : > { %1926 = vmatpush1.bf16.msra.mxu1 %v2440_v20  ;;  %v2460_v20 = vcombine.low %v1471_v8, %v1475_v9 }
 0x2ac   : > { %1927 = vmatprep.subr.bf16.mxu1 %v2433_v28  ;;  %v2443_v28 = vcombine.high %v1454_v23, %v1458_v24 }
 0x2af   : > { %1928 = vmatpush1.bf16.msra.mxu1 %v2432_v27  ;;  %v2452_v27 = vcombine.low %v1463_v16, %v1467_v18 }
 0x2b0   : > { %1999 = vmatprep.subr.bf16.mxu1 %v2493_v37 }
 0x352   : > { %v1434_v39 = vpop.f32.mrf.mxu1 }
 0x353   : > { %v1435_v41 = vadd.f32 %v2421_v38, %v1434_v39 }
 0x354   : > { %v2674_v40 = vpop.f32.mrf.mxu1 }
 0x355   : > { %v1441_v49 = vmax.f32 %v1435_v41, 0.0  ;;  %v1510_v40 = vlaneseq }
 0x356   : > { %v1437_v42 = vpop.f32.mrf.mxu1 }
 0x357   : > { %v1438_v43 = vadd.f32 %v2421_v38, %v1437_v42  ;;  %v2434_v38 = vcombine.low %v1446_v30, %v1450_v31  ;;  %v3179_v41 = vshrl.u32 %v1510_v40, 7 }
 0x358   : > { %v2675_v45 = vpop.f32.mrf.mxu1 }
 0x359   : > { %v1442_v50 = vmax.f32 %v1438_v43, 0.0  ;;  %v1512_v42 = vsub.s32 0, %v3179_v41  ;;  %v1520_v43 = vsub.s32 2, %v3179_v41  ;;  %v1516_v45 = vsub.s32 1, %v3179_v41 }
 0x35a   : > { %v1524_v46 = vsub.s32 3, %v3179_v41 }
 0x35b   : > { %v3173_v51 = vpack.c.bf16 %v1442_v50, %v1441_v49  ;;  %v1513_v47 = vrot.slane %v3186_v44, %v1512_v42  ;;  %v1521_v48 = vrot.slane %v3186_v44, %v1520_v43  ;;  %v1517_v49 = vrot.slane %v3186_v44, %v1516_v45 }
 0x35c   : > { %v1525_v50 = vrot.slane %v3186_v44, %v1524_v46 }
 0x35d   : > { %1903 = vmatmul.mubr.bf16.vlgmr.msra.gmra.mxu0 %v3173_v51  ;;  %1946 = vmatmul.mubr.bf16.vlgmr.msra.gmra.mxu1 %v3173_v51 }
 0x35e   : > { %1957 = vmatpush1.bf16.msra.mxu0 %v2490_v32  ;;  %2000 = vmatpush1.bf16.msra.mxu1 %v2492_v36  ;;  %v1447_v32 = vld [vmem:[#allocation4 + $0x18] sm:$0xff]  ;;  %v2435_v36 = vcombine.high %v1446_v30, %v1450_v31  ;;  %v1540_v30 = vsub.s32 7, %v3179_v41 }
 0x35f   : > { %1958 = vmatprep.subr.bf16.mxu0 %v2483_v52  ;;  %2001 = vmatprep.subr.bf16.mxu1 %v2485_v53  ;;  %v2437_v37 = vcombine.high %v1447_v32, %v1451_v33  ;;  %v2436_v39 = vcombine.low %v1447_v32, %v1451_v33 }
 0x360   : > { %1988 = vmatprep.mubr.bf16.mxu0 %v2938_v35  ;;  %2031 = vmatprep.mubr.bf16.mxu1 %v2938_v35  ;;  %v2444_v35 = vcombine.low %v1455_v17, %v1459_v25 }
 0x362   : > { %1959 = vmatpush1.bf16.msra.mxu0 %v2482_v58  ;;  %2002 = vmatpush1.bf16.msra.mxu1 %v2484_v59 }
 0x363   : > { %1960 = vmatprep.subr.bf16.mxu0 %v2475_v60  ;;  %2003 = vmatprep.subr.bf16.mxu1 %v2477_v61 }
 0x366   : > { %1961 = vmatpush1.bf16.msra.mxu0 %v2474_v2  ;;  %2004 = vmatpush1.bf16.msra.mxu1 %v2476_v4 }
 0x367   : > { %1962 = vmatprep.subr.bf16.mxu0 %v2467_v5  ;;  %2005 = vmatprep.subr.bf16.mxu1 %v2469_v6 }
 0x36a   : > { %1963 = vmatpush1.bf16.msra.mxu0 %v2466_v10  ;;  %2006 = vmatpush1.bf16.msra.mxu1 %v2468_v11 }
 0x36b   : > { %1964 = vmatprep.subr.bf16.mxu0 %v2459_v12  ;;  %2007 = vmatprep.subr.bf16.mxu1 %v2461_v13 }
 0x36e   : > { %1965 = vmatpush1.bf16.msra.mxu0 %v2458_v19  ;;  %2008 = vmatpush1.bf16.msra.mxu1 %v2460_v20 }
 0x36f   : > { %1966 = vmatprep.subr.bf16.mxu0 %v2451_v21  ;;  %2009 = vmatprep.subr.bf16.mxu1 %v2453_v22 }
 0x372   : > { %1967 = vmatpush1.bf16.msra.mxu0 %v2450_v26  ;;  %2010 = vmatpush1.bf16.msra.mxu1 %v2452_v27  ;;  %v1528_v26 = vsub.s32 4, %v3179_v41  ;;  %v1536_v27 = vsub.s32 6, %v3179_v41 }
 0x373   : > { %1968 = vmatprep.subr.bf16.mxu0 %v2443_v28  ;;  %2011 = vmatprep.subr.bf16.mxu1 %v2445_v29  ;;  %v1532_v29 = vsub.s32 5, %v3179_v41 }
 0x374   : > { %v1529_v31 = vrot.slane %v3186_v44, %v1528_v26  ;;  %v1537_v32 = vrot.slane %v3186_v44, %v1536_v27 }
 0x375   : > { %v1533_v33 = vrot.slane %v3186_v44, %v1532_v29 }
 0x376   : > { %1969 = vmatpush1.bf16.msra.mxu0 %v2442_v34  ;;  %2012 = vmatpush1.bf16.msra.mxu1 %v2444_v35  ;;  %v1541_v34 = vrot.slane %v3186_v44, %v1540_v30 }
 0x377   : > { %1970 = vmatprep.subr.bf16.mxu0 %v2435_v36  ;;  %2013 = vmatprep.subr.bf16.mxu1 %v2437_v37 }
 0x37a   : > { %1971 = vmatpush1.bf16.msra.mxu0 %v2434_v38  ;;  %2014 = vmatpush1.bf16.msra.mxu1 %v2436_v39 }
 0x37d   : > { %1989 = vmatmul.mubr.bf16.vlgmr.msra.gmra.mxu0 %v3173_v51  ;;  %2032 = vmatmul.mubr.bf16.vlgmr.msra.gmra.mxu1 %v3173_v51 }
 0x41d   : > { %v1904_v51 = vpop.f32.mrf.mxu0  ;;  %v1947_v52 = vpop.f32.mrf.mxu1 }
 0x41e   : > { %v1905_v53 = vadd.f32 %v1904_v51, %v1513_v47  ;;  %v1948_v54 = vadd.f32 %v1947_v52, %v1521_v48 }
 0x41f   : > { %v1906_v55 = vpop.f32.mrf.mxu0  ;;  %v1949_v56 = vpop.f32.mrf.mxu1 }
 0x420   : > { %v2494_v57 = vmul.f32 -1.442695, %v1905_v53  ;;  %v2496_v58 = vmul.f32 -1.442695, %v1948_v54  ;;  %v1907_v59 = vadd.f32 %v1906_v55, %v1517_v49  ;;  %v1950_v60 = vadd.f32 %v1949_v56, %v1525_v50 }
 0x421   : > { %v1908_v61 = vpop.f32.mrf.mxu0  ;;  %v1951_v62 = vpop.f32.mrf.mxu1 }
 0x422   : > { %2797 = vpow2.f32 %v2494_v57  ;;  %v2495_v63 = vmul.f32 -1.442695, %v1907_v59  ;;  %v2497_v0 = vmul.f32 -1.442695, %v1950_v60  ;;  %v1909_v1 = vadd.f32 %v1908_v61, %v1513_v47 }
 0x423   : > { %2799 = vpow2.f32 %v2496_v58  ;;  %v1952_v2 = vadd.f32 %v1951_v62, %v1521_v48  ;;  %v1910_v4 = vpop.f32.mrf.mxu0  ;;  %v1953_v5 = vpop.f32.mrf.mxu1 }
 0x424   : > { %2801 = vpow2.f32 %v2495_v63  ;;  %v2502_v6 = vmul.f32 -1.442695, %v1909_v1  ;;  %v1911_v3 = vadd.f32 %v1910_v4, %v1517_v49  ;;  %v1954_v7 = vadd.f32 %v1953_v5, %v1525_v50 }
 0x425   : > { %2803 = vpow2.f32 %v2497_v0  ;;  %v2504_v8 = vmul.f32 -1.442695, %v1952_v2 }
 0x426   : > { %2805 = vpow2.f32 %v2502_v6  ;;  %v2503_v9 = vmul.f32 -1.442695, %v1911_v3  ;;  %v2505_v10 = vmul.f32 -1.442695, %v1954_v7 }
 0x427   : > { %2807 = vpow2.f32 %v2504_v8 }
 0x428   : > { %2809 = vpow2.f32 %v2503_v9 }
 0x429   : > { %2811 = vpow2.f32 %v2505_v10 }
 0x42f   : > { %v2798_v11 = vpop.eup %2797 }
 0x430   : > { %v2800_v12 = vpop.eup %2799  ;;  %v2090_v13 = vadd.f32 1.0, %v2798_v11 }
 0x431   : > { %v2802_v14 = vpop.eup %2801  ;;  %v2092_v15 = vadd.f32 1.0, %v2800_v12 }
 0x432   : > { %v2804_v16 = vpop.eup %2803  ;;  %2813 = vrcp.f32 %v2090_v13  ;;  %v2091_v18 = vadd.f32 1.0, %v2802_v14 }
 0x433   : > { %v2806_v19 = vpop.eup %2805  ;;  %2815 = vrcp.f32 %v2092_v15  ;;  %v2093_v20 = vadd.f32 1.0, %v2804_v16 }
 0x434   : > { %v2808_v21 = vpop.eup %2807  ;;  %2817 = vrcp.f32 %v2091_v18  ;;  %v2098_v22 = vadd.f32 1.0, %v2806_v19 }
 0x435   : > { %v2810_v23 = vpop.eup %2809  ;;  %2819 = vrcp.f32 %v2093_v20  ;;  %v2100_v24 = vadd.f32 1.0, %v2808_v21 }
 0x436   : > { %v2812_v17 = vpop.eup %2811  ;;  %2821 = vrcp.f32 %v2098_v22  ;;  %v2099_v25 = vadd.f32 1.0, %v2810_v23 }
 0x437   : > { %2823 = vrcp.f32 %v2100_v24  ;;  %v2101_v28 = vadd.f32 1.0, %v2812_v17 }
 0x438   : > { %2825 = vrcp.f32 %v2099_v25 }
 0x439   : > { %2827 = vrcp.f32 %v2101_v28 }
 0x43d   : > { %v1990_v35 = vpop.f32.mrf.mxu0  ;;  %v2033_v36 = vpop.f32.mrf.mxu1 }
 0x43e   : > { %v1991_v37 = vadd.f32 %v1990_v35, %v1529_v31  ;;  %v2034_v38 = vadd.f32 %v2033_v36, %v1537_v32 }
 0x43f   : > { %v2814_v39 = vpop.eup %2813  ;;  %v1992_v40 = vpop.f32.mrf.mxu0 }
 0x440   : > { %v2035_v42 = vpop.f32.mrf.mxu1  ;;  %v2816_v43 = vpop.eup %2815  ;;  %v2498_v45 = vmul.f32 -1.442695, %v1991_v37  ;;  %v2500_v41 = vmul.f32 -1.442695, %v2034_v38  ;;  %v1993_v46 = vadd.f32 %v1992_v40, %v1533_v33 }
 0x441   : > { %v2036_v47 = vadd.f32 %v2035_v42, %v1541_v34  ;;  %v2818_v48 = vpop.eup %2817  ;;  %v1994_v44 = vpop.f32.mrf.mxu0 }
 0x442   : > { %v2037_v49 = vpop.f32.mrf.mxu1  ;;  %v2820_v50 = vpop.eup %2819  ;;  %v2522_v51 = vpack.c.bf16 %v2818_v48, %v2814_v39  ;;  %2829 = vpow2.f32 %v2498_v45  ;;  %v2499_v52 = vmul.f32 -1.442695, %v1993_v46  ;;  %v1995_v56 = vadd.f32 %v1994_v44, %v1529_v31 }
 0x443   : > { %v2501_v53 = vmul.f32 -1.442695, %v2036_v47  ;;  %v2822_v54 = vpop.eup %2821  ;;  %v2523_v55 = vpack.c.bf16 %v2820_v50, %v2816_v43  ;;  %2831 = vpow2.f32 %v2500_v41  ;;  %v2038_v57 = vadd.f32 %v2037_v49, %v1537_v32  ;;  %v1996_v58 = vpop.f32.mrf.mxu0 }
 0x444   : > { %v2039_v59 = vpop.f32.mrf.mxu1  ;;  %v2824_v60 = vpop.eup %2823  ;;  %2186 = vst [vmem:[%s3207_s25] sm:$0xff] %v2522_v51  ;;  %2833 = vpow2.f32 %v2499_v52  ;;  %v1997_v61 = vadd.f32 %v1996_v58, %v1533_v33  ;;  %v2506_v0 = vmul.f32 -1.442695, %v1995_v56 }
 0x445   : > { %v2040_v62 = vadd.f32 %v2039_v59, %v1541_v34  ;;  %v2826_v63 = vpop.eup %2825  ;;  %2187 = vst [vmem:[%s3207_s25 + $0x8] sm:$0xff] %v2523_v55  ;;  %2835 = vpow2.f32 %v2501_v53  ;;  %v2508_v1 = vmul.f32 -1.442695, %v2038_v57 }
 0x446   : > { %v2828_v2 = vpop.eup %2827  ;;  %v2526_v4 = vpack.c.bf16 %v2826_v63, %v2822_v54  ;;  %v2507_v5 = vmul.f32 -1.442695, %v1997_v61  ;;  %2837 = vpow2.f32 %v2506_v0 }
 0x447   : > { %v2509_v6 = vmul.f32 -1.442695, %v2040_v62  ;;  %v2527_v3 = vpack.c.bf16 %v2828_v2, %v2824_v60  ;;  %2839 = vpow2.f32 %v2508_v1 }
 0x448   : > { %2190 = vst [vmem:[%s3207_s25 + $0x20] sm:$0xff] %v2526_v4  ;;  %2841 = vpow2.f32 %v2507_v5 }
 0x449   : > { %2191 = vst [vmem:[%s3207_s25 + $0x28] sm:$0xff] %v2527_v3  ;;  %2843 = vpow2.f32 %v2509_v6 }
 0x44f   : > { %v2830_v7 = vpop.eup %2829 }
 0x450   : > { %v2832_v8 = vpop.eup %2831  ;;  %v2094_v9 = vadd.f32 1.0, %v2830_v7 }
 0x451   : > { %v2834_v10 = vpop.eup %2833  ;;  %v2096_v11 = vadd.f32 1.0, %v2832_v8 }
 0x452   : > { %v2836_v12 = vpop.eup %2835  ;;  %2845 = vrcp.f32 %v2094_v9  ;;  %v2095_v13 = vadd.f32 1.0, %v2834_v10 }
 0x453   : > { %2847 = vrcp.f32 %v2096_v11  ;;  %v2097_v14 = vadd.f32 1.0, %v2836_v12  ;;  %v2838_v15 = vpop.eup %2837 }
 0x454   : > { %2849 = vrcp.f32 %v2095_v13  ;;  %v2840_v16 = vpop.eup %2839  ;;  %v2102_v18 = vadd.f32 1.0, %v2838_v15 }
 0x455   : > { %2851 = vrcp.f32 %v2097_v14  ;;  %v2842_v19 = vpop.eup %2841  ;;  %v2104_v20 = vadd.f32 1.0, %v2840_v16 }
 0x456   : > { %v2844_v21 = vpop.eup %2843  ;;  %2853 = vrcp.f32 %v2102_v18  ;;  %v2103_v22 = vadd.f32 1.0, %v2842_v19 }
 0x457   : > { %2855 = vrcp.f32 %v2104_v20  ;;  %v2105_v23 = vadd.f32 1.0, %v2844_v21 }
 0x458   : > { %2857 = vrcp.f32 %v2103_v22 }
 0x459   : > { %2859 = vrcp.f32 %v2105_v23 }
 0x45f   : > { %v2846_v24 = vpop.eup %2845 }
 0x460   : > { %v2848_v17 = vpop.eup %2847 }
 0x461   : > { %v2850_v25 = vpop.eup %2849 }
 0x462   : > { %v2852_v26 = vpop.eup %2851  ;;  %v2524_v27 = vpack.c.bf16 %v2850_v25, %v2846_v24 }
 0x463   : > { %v2525_v28 = vpack.c.bf16 %v2852_v26, %v2848_v17  ;;  %v2854_v29 = vpop.eup %2853 }
 0x464   : > { %2188 = vst [vmem:[%s3207_s25 + $0x10] sm:$0xff] %v2524_v27  ;;  %v2856_v30 = vpop.eup %2855 }
 0x465   : > { %2189 = vst [vmem:[%s3207_s25 + $0x18] sm:$0xff] %v2525_v28  ;;  %v2858_v31 = vpop.eup %2857 }
 0x466   : > { %v2860_v32 = vpop.eup %2859  ;;  %v2528_v33 = vpack.c.bf16 %v2858_v31, %v2854_v29 }
 0x467   : > { %v2529_v34 = vpack.c.bf16 %v2860_v32, %v2856_v30 }
 0x468   : > { %2192 = vst [vmem:[%s3207_s25 + $0x30] sm:$0xff] %v2528_v33 }
 0x469   : > { %2193 = vst [vmem:[%s3207_s25 + $0x38] sm:$0xff] %v2529_v34 }
 0x46a PF: > { %s24_s17 = sadd.s32 1, %s2927_s17  }
 0x46b   : > { %p21_p3 = scmp.ge.s32.totalorder %s24_s17, 4  }
 0x46d   :  { %23 = sbr.rel (!%p21_p3) target bundleno = 2 (0x2), region = 114 }
 0x472   :  { %2235 = vsyncpa [#allocation3], 1 }
 0x473   :  { %2237 = vsyncpa [#allocation3 + $0x1], 1 }
 0x474   :  { %2238 = vsyncpa [#allocation5], 1 }

</bundles_post_ra>
